<compile_context>
chip_gen: v5e
topology: v5e:2x2
jax: 0.10.0
libtpu: 0.0.40
codegen_flags: <defaults>
</compile_context>

<pallas_src>
import functools

import jax
import jax.numpy as jnp
import numpy as np
from jax.experimental import pallas as pl
from jax.experimental.pallas import tpu as pltpu


def _round_up(n, m):
    return ((n + m - 1) // m) * m


# ----------------------------- Pallas kernel ------------------------------- #

def _mlp_softmax_kernel(x_ref, w1_ref, b1_ref, w2_ref, b2_ref, o_ref, *,
                        approx_recip):
    """o = softmax(relu(x @ w1 + b1) @ w2 + b2, axis=-1).

    Matmuls run on the MXU with f32 accumulation; bias/ReLU/softmax epilogue
    stays in f32 on the VPU/EUP.  The hidden activation lives only in
    VMEM/vregs (never written back to HBM).
    """
    w1 = w1_ref[...]
    w2 = w2_ref[...]

    # In-kernel cast of x to the matmul operand dtype (no-op on the f32 path).
    # Doing it here avoids materializing a casted copy of x in HBM per call.
    x = x_ref[...].astype(w1.dtype)

    h = jnp.dot(x, w1, preferred_element_type=jnp.float32)
    h = jnp.maximum(h + b1_ref[...], 0.0)

    logits = jnp.dot(h.astype(w2.dtype), w2,
                     preferred_element_type=jnp.float32) + b2_ref[...]

    m = jnp.max(logits, axis=-1, keepdims=True)
    e = jnp.exp(logits - m)
    denom = jnp.sum(e, axis=-1, keepdims=True)
    # EUP reciprocal: off the VALU critical path; approx only on the bf16 path.
    o_ref[...] = e * pl.reciprocal(denom, approx=approx_recip)


# ------------------------------- wrapper ----------------------------------- #

def single_hidden_layer_forward(x, w1, b1, w2, b2, *, block_m=512):
    """Fused forward pass.

    x : (M, S)                 -- any float dtype; cast to w1.dtype in-kernel
    w1: (S, H), b1: (H,)       -- fc1, already stored as (in, out)
    w2: (H, A), b2: (A,)       -- output layer, already stored as (in, out)

    Matmul operand precision follows the dtype of w1/w2 (cast the weights once
    at parameter-prep time for the bf16 path); accumulation and the epilogue
    are always f32.
    """
    M, S = x.shape
    H = w1.shape[1]
    A = w2.shape[1]

    # Row tile: multiple of 8 (sublane rule), at most block_m, and capped so
    # large-M runs keep >= 4 grid steps (lets v7x's 2 TCs split the row axis).
    # Even tm=4096 double-buffered is < 2 MiB of VMEM, so block_m can be raised
    # further for very large M.
    tm = max(8, _round_up(min(block_m, pl.cdiv(M, 4)), 8))
    grid_m = pl.cdiv(M, tm)

    b1r = b1.reshape(1, H).astype(jnp.float32)
    b2r = b2.reshape(1, A).astype(jnp.float32)

    approx = (w1.dtype == jnp.bfloat16)
    kernel = functools.partial(_mlp_softmax_kernel, approx_recip=approx)

    # NOTE: A=4 makes the output stores masked (4/128 lanes).  A lane-dense
    # repacked output slab only pays off at production-scale M and costs an
    # in-kernel XLU relayout, so it is intentionally not done here.
    out = pl.pallas_call(
        kernel,
        out_shape=jax.ShapeDtypeStruct((M, A), jnp.float32),
        grid=(grid_m,),
        in_specs=[
            pl.BlockSpec((tm, S), lambda i: (i, 0)),   # x rows for this tile
            pl.BlockSpec((S, H), lambda i: (0, 0)),    # w1 (resident)
            pl.BlockSpec((1, H), lambda i: (0, 0)),    # b1
            pl.BlockSpec((H, A), lambda i: (0, 0)),    # w2 (resident)
            pl.BlockSpec((1, A), lambda i: (0, 0)),    # b2
        ],
        out_specs=pl.BlockSpec((tm, A), lambda i: (i, 0)),
        compiler_params=pltpu.CompilerParams(
            dimension_semantics=("parallel",)),        # megacore rows on v7x
    )(x, w1, b1r, w2, b2r)

    return out


# --------------------------------- main ------------------------------------ #

if __name__ == "__main__":
    # Shapes implied by the module: batch=2, state_size=16, fc_units=32,
    # action_size=4.  (At M=2 the kernel is pure launch overhead; the tiling
    # above targets production-scale M.)
    B, state_size, fc_units, action_size = 2, 16, 32, 4

    key = jax.random.PRNGKey(0)
    k_x, k_w1, k_b1, k_w2, k_b2, k_xl = jax.random.split(key, 6)

    def init(k, shape, fan_in):
        bound = 1.0 / np.sqrt(fan_in)
        return jax.random.uniform(k, shape, jnp.float32, -bound, bound)

    # PyTorch nn.Linear stores weight as (out_features, in_features); fold the
    # transpose once here (one-time parameter prep, zero per-call cost).
    w1_pt = init(k_w1, (fc_units, state_size), state_size)
    b1 = init(k_b1, (fc_units,), state_size)
    w2_pt = init(k_w2, (action_size, fc_units), fc_units)
    b2 = init(k_b2, (action_size,), fc_units)
    w1 = w1_pt.T
    w2 = w2_pt.T

    x = jax.random.normal(k_x, (B, state_size), jnp.float32)

    # Pure-JAX reference of the PyTorch forward.
    def reference(xv):
        h = jnp.maximum(xv @ w1 + b1, 0.0)
        return jax.nn.softmax(h @ w2 + b2, axis=1)

    ref = np.asarray(reference(x))

    # f32 weight path (exact reciprocal, tight tolerance).
    out_f32 = jax.block_until_ready(
        single_hidden_layer_forward(x, w1, b1, w2, b2))
    np.testing.assert_allclose(np.asarray(out_f32), ref, rtol=1e-4, atol=1e-5)
    assert out_f32.shape == (B, action_size)
    assert np.allclose(np.asarray(out_f32).sum(axis=1), 1.0, atol=1e-5)

    # bf16 weight path (x stays f32 in HBM and is cast in-kernel; approx
    # reciprocal on the EUP) -- looser tolerance for bf16 operand rounding.
    w1_bf16 = w1.astype(jnp.bfloat16)      # one-time parameter prep
    w2_bf16 = w2.astype(jnp.bfloat16)
    out_bf16 = jax.block_until_ready(
        single_hidden_layer_forward(x, w1_bf16, b1, w2_bf16, b2))
    np.testing.assert_allclose(np.asarray(out_bf16), ref, rtol=5e-2, atol=5e-3)

    # Multi-step grid + ragged last row-block sanity check (M=50, tm=16 -> 4
    # grid steps, last block partial and masked on store).
    M_big = 50
    x_big = jax.random.normal(k_xl, (M_big, state_size), jnp.float32)
    ref_big = np.asarray(reference(x_big))
    out_big = jax.block_until_ready(
        single_hidden_layer_forward(x_big, w1, b1, w2, b2, block_m=16))
    np.testing.assert_allclose(np.asarray(out_big), ref_big,
                               rtol=1e-4, atol=1e-5)
    assert out_big.shape == (M_big, action_size)
    assert np.allclose(np.asarray(out_big).sum(axis=1), 1.0, atol=1e-5)

    print("KERNEL_OK")
</pallas_src>

<mosaic_0001>
module attributes {stable_mosaic.version = 11 : i64} {
  func.func @_mlp_softmax_kernel(%arg0: i32, %arg1: memref<8x16xf32, #tpu.memory_space<vmem>>, %arg2: memref<16x32xf32, #tpu.memory_space<vmem>>, %arg3: memref<1x32xf32, #tpu.memory_space<vmem>>, %arg4: memref<32x4xf32, #tpu.memory_space<vmem>>, %arg5: memref<1x4xf32, #tpu.memory_space<vmem>>, %arg6: memref<8x4xf32, #tpu.memory_space<vmem>>) attributes {dimension_semantics = [#tpu.dimension_semantics<parallel>], iteration_bounds = array<i64: 1>, scalar_prefetch = 0 : i64, scratch_operands = 0 : i64, tpu.core_type = #tpu.core_type<tc>, window_params = [{transform_indices = @transform_0, window_bounds = array<i64: 8, 16>}, {pipeline_mode = #tpu.pipeline_mode<synchronous>, transform_indices = @transform_1, window_bounds = array<i64: 16, 32>}, {pipeline_mode = #tpu.pipeline_mode<synchronous>, transform_indices = @transform_2, window_bounds = array<i64: 1, 32>}, {pipeline_mode = #tpu.pipeline_mode<synchronous>, transform_indices = @transform_3, window_bounds = array<i64: 32, 4>}, {pipeline_mode = #tpu.pipeline_mode<synchronous>, transform_indices = @transform_4, window_bounds = array<i64: 1, 4>}, {transform_indices = @transform_5, window_bounds = array<i64: 8, 4>}]} {
    %c0 = arith.constant 0 : index
    %c0_0 = arith.constant 0 : index
    %0 = vector.load %arg2[%c0, %c0_0] : memref<16x32xf32, #tpu.memory_space<vmem>>, vector<16x32xf32>
    %c0_1 = arith.constant 0 : index
    %c0_2 = arith.constant 0 : index
    %1 = vector.load %arg4[%c0_1, %c0_2] : memref<32x4xf32, #tpu.memory_space<vmem>>, vector<32x4xf32>
    %c0_3 = arith.constant 0 : index
    %c0_4 = arith.constant 0 : index
    %2 = vector.load %arg1[%c0_3, %c0_4] : memref<8x16xf32, #tpu.memory_space<vmem>>, vector<8x16xf32>
    %cst = arith.constant dense<0.000000e+00> : vector<8x32xf32>
    %3 = tpu.matmul %2, %0, %cst {dimension_numbers = #tpu.dot_dimension_numbers<[1], [0], [0], [1], [0, 0, 1, 1], [], []>} : vector<8x16xf32>, vector<16x32xf32>, vector<8x32xf32> -> vector<8x32xf32>
    %c0_5 = arith.constant 0 : index
    %c0_6 = arith.constant 0 : index
    %4 = vector.load %arg3[%c0_5, %c0_6] : memref<1x32xf32, #tpu.memory_space<vmem>>, vector<1x32xf32>
    %5 = vector.broadcast %4 : vector<1x32xf32> to vector<8x32xf32>
    %6 = arith.addf %3, %5 : vector<8x32xf32>
    %cst_7 = arith.constant 0.000000e+00 : f32
    %7 = vector.broadcast %cst_7 : f32 to vector<8x32xf32>
    %8 = arith.maximumf %6, %7 : vector<8x32xf32>
    %cst_8 = arith.constant dense<0.000000e+00> : vector<8x4xf32>
    %9 = tpu.matmul %8, %1, %cst_8 {dimension_numbers = #tpu.dot_dimension_numbers<[1], [0], [0], [1], [0, 0, 1, 1], [], []>} : vector<8x32xf32>, vector<32x4xf32>, vector<8x4xf32> -> vector<8x4xf32>
    %c0_9 = arith.constant 0 : index
    %c0_10 = arith.constant 0 : index
    %10 = vector.load %arg5[%c0_9, %c0_10] : memref<1x4xf32, #tpu.memory_space<vmem>>, vector<1x4xf32>
    %11 = vector.broadcast %10 : vector<1x4xf32> to vector<8x4xf32>
    %12 = arith.addf %9, %11 : vector<8x4xf32>
    %cst_11 = arith.constant dense<0xFF800000> : vector<8xf32>
    %13 = vector.multi_reduction <maximumf>, %12, %cst_11 [1] : vector<8x4xf32> to vector<8xf32>
    %14 = vector.shape_cast %13 : vector<8xf32> to vector<8x1xf32>
    %15 = vector.broadcast %14 : vector<8x1xf32> to vector<8x4xf32>
    %16 = arith.subf %12, %15 : vector<8x4xf32>
    %17 = math.exp %16 : vector<8x4xf32>
    %cst_12 = arith.constant dense<0.000000e+00> : vector<8xf32>
    %18 = vector.multi_reduction <add>, %17, %cst_12 [1] : vector<8x4xf32> to vector<8xf32>
    %19 = vector.shape_cast %18 : vector<8xf32> to vector<8x1xf32>
    %20 = tpu.reciprocal %19 : vector<8x1xf32> -> vector<8x1xf32>
    %21 = vector.broadcast %20 : vector<8x1xf32> to vector<8x4xf32>
    %22 = arith.mulf %17, %21 : vector<8x4xf32>
    %c0_13 = arith.constant 0 : index
    %c0_14 = arith.constant 0 : index
    %23 = vector.load %arg6[%c0_13, %c0_14] : memref<8x4xf32, #tpu.memory_space<vmem>>, vector<8x4xf32>
    tpu.vector_store %arg6[%c0_13, %c0_14], %22 {strides = array<i32>} : memref<8x4xf32, #tpu.memory_space<vmem>>, vector<8x4xf32>,
    return
  }
  func.func @transform_0(%arg0: i32) -> (i32, i32) {
    %c0_i32 = arith.constant 0 : i32
    %c0_i32_0 = arith.constant 0 : i32
    return %arg0, %c0_i32 : i32, i32
  }
  func.func @transform_1(%arg0: i32) -> (i32, i32) {
    %c0_i32 = arith.constant 0 : i32
    %c0_i32_0 = arith.constant 0 : i32
    %c0_i32_1 = arith.constant 0 : i32
    return %c0_i32, %c0_i32_0 : i32, i32
  }
  func.func @transform_2(%arg0: i32) -> (i32, i32) {
    %c0_i32 = arith.constant 0 : i32
    %c0_i32_0 = arith.constant 0 : i32
    %c0_i32_1 = arith.constant 0 : i32
    return %c0_i32, %c0_i32_0 : i32, i32
  }
  func.func @transform_3(%arg0: i32) -> (i32, i32) {
    %c0_i32 = arith.constant 0 : i32
    %c0_i32_0 = arith.constant 0 : i32
    %c0_i32_1 = arith.constant 0 : i32
    return %c0_i32, %c0_i32_0 : i32, i32
  }
  func.func @transform_4(%arg0: i32) -> (i32, i32) {
    %c0_i32 = arith.constant 0 : i32
    %c0_i32_0 = arith.constant 0 : i32
    %c0_i32_1 = arith.constant 0 : i32
    return %c0_i32, %c0_i32_0 : i32, i32
  }
  func.func @transform_5(%arg0: i32) -> (i32, i32) {
    %c0_i32 = arith.constant 0 : i32
    %c0_i32_0 = arith.constant 0 : i32
    return %arg0, %c0_i32 : i32, i32
  }
}

</mosaic_0001>

<bundles_post_ra>
// kernel: tpu_custom_call.1
= control target key start
LH: loop header
LB: loop body
LE: loop exit
PB: predicated region body
PF: predicated region fallthrough
CT: control target
= control target key end

     0   :  { %10 = vsyncpa [#allocation3], 0  ;;  %vm32_vm0 = vcmask 130048   ;;  %vm61_vm1 = vcmask 261120   ;;  %vm85_vm2 = vcmask 31744   ;;  %s232_s0 = inlined_call_operand.vmem [shape: f32[2,16], index: 0, kind: input, shape index: {}]   ;;  %s233_s1 = inlined_call_operand.vmem [shape: f32[16,32], index: 1, kind: input, shape index: {}]   ;;  %s234_s2 = inlined_call_operand.vmem [shape: f32[1,32], index: 2, kind: input, shape index: {}]   ;;  %s235_s3 = inlined_call_operand.vmem [shape: f32[32,4], index: 3, kind: input, shape index: {}]   ;;  %s236_s4 = inlined_call_operand.vmem [shape: f32[1,4], index: 4, kind: input, shape index: {}]   ;;  %s237_s5 = inlined_call_operand.hbm [shape: f32[2,4], index: 5, kind: output, shape index: {}]  }
   0x1   :  { %v22_v0 = vld [vmem:[%s233_s1 + $0x8] sm:$0xff]  ;;  %v21_v1 = vld [vmem:[%s233_s1] sm:$0xff]  ;;  %v26_v3 = vld [vmem:[%s235_s3 + $0x18] sm:$0xff] }
   0x2   :  { %50 = vmatpush.msra.mxu0 %v22_v0  ;;  %v27_v2 = vld [vmem:[%s232_s0] sm:$0xff]  ;;  %77 = vmatpush.msra.mxu1 %v26_v3  ;;  %v25_v4 = vld [vmem:[%s235_s3 + $0x10] sm:$0xff]  ;;  %v24_v5 = vld [vmem:[%s235_s3 + $0x8] sm:$0xff] }
   0x3   :  { %v23_v6 = vld [vmem:[%s235_s3] sm:$0xff] }
   0x4   :  { %51 = vmatpush.msra.mxu0 %v21_v1  ;;  %78 = vmatpush.msra.mxu1 %v25_v4  ;;  %v134_v7 = vld [vmem:[%s234_s2] ss:$0 sm:$0xff] }
   0x5   :  { %129 = vmatmul.msk.f32.vlgmr.msra.gmra.mxu0 %vm32_vm0, %v27_v2  ;;  %v135_v11 = vld [vmem:[%s236_s4] ss:$0 sm:$0xff] }
   0x6   :  { %79 = vmatpush.msra.mxu1 %v24_v5 }
   0x8   :  { %80 = vmatpush.msra.mxu1 %v23_v6 }
  0x82   :  { %v53_v8 = vpop.f32.mrf.mxu0 }
  0x83   :  { %v54_v9 = vadd.f32 %v134_v7, %v53_v8 }
  0x85   :  { %v56_v10 = vmax.f32 %v54_v9, 0.0 }
  0x87   :  { %130 = vmatmul.msk.f32.vlgmr.msra.gmra.mxu1 %vm61_vm1, %v56_v10 }
 0x104   :  { %v82_v12 = vpop.f32.mrf.mxu1 }
 0x105   :  { %v83_v13 = vadd.f32 %v135_v11, %v82_v12 }
 0x107   :  { %v86_v14 = vsel %vm85_vm2, %v83_v13, -inf }
 0x108   :  { %87 = vmax.xlane.f32.xlu0 %v86_v14 }
 0x17b   :  { %v88_v15 = vpop.xlane.xlu0 %87 }
 0x17c   :  { %v89_v16 = vsub.f32 %v83_v13, %v88_v15 }
 0x17e   :  { %v90_v17 = vmul.f32 1.442695, %v89_v16 }
 0x180   :  { %136 = vpow2.f32 %v90_v17 }
 0x186   :  { %v137_v18 = vpop.eup %136 }
 0x187   :  { %v92_v19 = vsel %vm85_vm2, %v137_v18, 0.0 }
 0x188   :  { %93 = vadd.xlane.f32.xlu0 %v92_v19 }
 0x1fb   :  { %v94_v20 = vpop.xlane.xlu0 %93 }
 0x1fc   :  { %138 = vrcp.f32 %v94_v20  ;;  %v106_v24 = vand.u32 2147483648, %v94_v20  ;;  %v104_v26 = vand.u32 2147483647, %v94_v20  ;;  %vm100_vm4 = vweird.f32 %v94_v20 }
 0x1fe   :  { %v107_v28 = vor.u32 1.1754944e-38, %v106_v24  ;;  %vm105_vm6 = vcmp.eq.f32.partialorder %v104_v26, 8.507059e+37 }
 0x202   :  { %v139_v21 = vpop.eup %138 }
 0x203   :  { %v96_v22 = vmul.f32 %v139_v21, %v94_v20  ;;  %vm101_vm3 = vweird.f32 %v139_v21 }
 0x204   :  { %vm102_vm5 = vmor %vm100_vm4, %vm101_vm3 }
 0x205   :  { %v97_v23 = vsub.f32 1.0, %v96_v22 }
 0x207   :  { %v98_v25 = vmul.f32 %v139_v21, %v97_v23 }
 0x209   :  { %v99_v27 = vadd.f32 %v139_v21, %v98_v25 }
 0x20b   :  { %v103_v29 = vsel %vm102_vm5, %v139_v21, %v99_v27 }
 0x20c   :  { %v108_v30 = vsel %vm105_vm6, %v107_v28, %v103_v29 }
 0x20d   :  { %v109_v31 = vmul.f32 %v137_v18, %v108_v30 }
 0x20f   :  { %110 = vst.msk [vmem:[#allocation2] sm:$0xff] %vm85_vm2, %v109_v31 }
 0x210   :  { %114 = vsyncadd [#allocation3], 96  ;;  %s117_s4 = sshll.u32 %s237_s5, 4  ;;  %s166_s9 = smov [#allocation2]   ;;  %s118_s4 = int_to_ptr.hbm [resolvable:$true] %s117_s4 }
 0x211   :  { %s115_s10 = sshll.u32 %s166_s9, 4  ;;  %s167_s11 = smov 32   ;;  %s116_s10 = int_to_ptr.vmem [resolvable:$true] %s115_s10 }
 0x212   :  { %s168_s12 = smov 2  }
 0x213   :  { %123 = dma.vmem_to_hbm [thread:$0]  %s116_s10, 32, %s118_s4, [#allocation3], %s167_s11, %s167_s11, %s168_s12  }
 0x214   :  { %164 = dma.done.wait [#allocation3], 128  }
 0x215   :  { %165 = vsyncadd [#allocation3], 4294967168 }
 0x216   :  { %128 = vsyncpa [#allocation3], 1 }

</bundles_post_ra>
